<compile_context>
chip_gen: v5e
topology: v5e:2x2
jax: 0.10.0
libtpu: 0.0.40
codegen_flags: <defaults>
</compile_context>

<pallas_src>
import functools

import jax
import jax.numpy as jnp
from jax.experimental import pallas as pl
from jax.experimental.pallas import tpu as pltpu

LANES = 128
SUBLANES = 8
EPS = 1e-8


def _smape_partial_kernel(yt_ref, yp_ref, out_ref, *, rows, row_tile,
                          chunk_rows, steps, nb, need_mask):
    c = pl.program_id(0)
    i = pl.program_id(1)
    blk = c * steps + i

    # Zero this core's resident accumulator tile on its first inner step.
    @pl.when(i == 0)
    def _():
        out_ref[...] = jnp.zeros_like(out_ref)

    n_chunks = row_tile // chunk_rows

    def chunk_body(ci, acc, mask):
        start = pl.multiple_of(ci * chunk_rows, chunk_rows)
        yt = yt_ref[pl.ds(start, chunk_rows), :].astype(jnp.float32)
        yp = yp_ref[pl.ds(start, chunk_rows), :].astype(jnp.float32)
        den = jnp.abs(yt) + jnp.abs(yp) + EPS
        # Divide -> EUP reciprocal (exact); frees VALU slots on v7x.
        ratio = jnp.abs(yt - yp) * pl.reciprocal(den, approx=False)
        if mask:
            # Only emitted for the last (partial) block: discard overhang rows.
            row_idx = (blk * row_tile + start +
                       jax.lax.broadcasted_iota(jnp.int32, ratio.shape, 0))
            ratio = jnp.where(row_idx < rows, ratio, 0.0)
        # Fold to a single vreg-shaped (8,128) partial (VALU-only).
        return acc + ratio.reshape(-1, SUBLANES, LANES).sum(axis=0)

    def accumulate(mask):
        acc = jax.lax.fori_loop(
            0, n_chunks,
            functools.partial(chunk_body, mask=mask),
            jnp.zeros((SUBLANES, LANES), jnp.float32))
        out_ref[...] += acc[jnp.newaxis]

    if need_mask:
        # Mask only the last real block; skip the duplicated overhang step.
        @pl.when(blk == nb - 1)
        def _():
            accumulate(mask=True)

        @pl.when(blk < nb - 1)
        def _():
            accumulate(mask=False)
    else:
        @pl.when(blk < nb)
        def _():
            accumulate(mask=False)


def smape_loss(y_true, y_pred, *, max_row_tile=8192):
    assert y_true.shape == y_pred.shape, "y_true / y_pred shape mismatch"
    n = y_true.size

    yt_flat = jnp.ravel(y_true)
    yp_flat = jnp.ravel(y_pred)

    # Lane-unaligned tail (<128 elements): handled in plain JAX in the wrapper
    # instead of padding (and copying) the whole tensor.
    rem = n % LANES
    n_main = n - rem
    if rem:
        tt = yt_flat[n_main:].astype(jnp.float32)
        tp = yp_flat[n_main:].astype(jnp.float32)
        tail = jnp.sum(jnp.abs(tt - tp) / (jnp.abs(tt) + jnp.abs(tp) + EPS))
    else:
        tail = jnp.float32(0.0)

    if n_main == 0:
        return 2.0 * tail / jnp.float32(n)

    yt = (yt_flat if rem == 0 else yt_flat[:n_main]).reshape(-1, LANES)
    yp = (yp_flat if rem == 0 else yp_flat[:n_main]).reshape(-1, LANES)
    rows = n_main // LANES

    itemsize = jnp.dtype(y_true.dtype).itemsize
    # Sublane tile for the native dtype (f32: 8, bf16: 16, int8/u8: 32).
    sub = max(SUBLANES, SUBLANES * (4 // max(itemsize, 1)))

    # Row tile: multiple of the dtype sublane tile, capped at max_row_tile,
    # collapsed to a single block for small inputs.
    rows_r = ((rows + sub - 1) // sub) * sub
    row_tile = min(max_row_tile, rows_r)
    row_tile = max(sub, (row_tile // sub) * sub)

    nb = (rows + row_tile - 1) // row_tile          # number of row blocks
    # Unconditional megacore split whenever there is >1 block (v7x uses both
    # TCs even when nb is odd; ~free on single-TC v5e/v6e).
    num_cores = 2 if nb >= 2 else 1
    steps = (nb + num_cores - 1) // num_cores
    need_mask = (nb * row_tile != rows)

    # Inner chunk size: divides row_tile, multiple of the sublane tile,
    # ~128 rows to bound vreg live ranges per fori_loop iteration.
    chunk_rows = sub
    for cand in (128, 64, 32, 16, 8):
        if cand % sub == 0 and row_tile % cand == 0:
            chunk_rows = cand
            break

    kernel = functools.partial(
        _smape_partial_kernel, rows=rows, row_tile=row_tile,
        chunk_rows=chunk_rows, steps=steps, nb=nb, need_mask=need_mask)

    in_block_bytes = row_tile * LANES * itemsize
    # 2 inputs x 2 pipeline buffers + headroom for out tiles / compiler scratch.
    vmem_limit = max(16 << 20, 4 * in_block_bytes + (6 << 20))

    cost = pl.CostEstimate(
        flops=int(8 * n_main),
        transcendentals=int(n_main),
        bytes_accessed=int(2 * n_main * itemsize
                           + num_cores * SUBLANES * LANES * 4))

    def in_map(c, i):
        # Clamp the duplicated overhang step (odd nb, 2-core split) to the
        # last real block; its accumulate is skipped in-kernel.
        return (jnp.minimum(c * steps + i, nb - 1), 0)

    partials = pl.pallas_call(
        kernel,
        out_shape=jax.ShapeDtypeStruct((num_cores, SUBLANES, LANES),
                                       jnp.float32),
        grid_spec=pltpu.PrefetchScalarGridSpec(
            num_scalar_prefetch=0,
            grid=(num_cores, steps),
            in_specs=[
                pl.BlockSpec((row_tile, LANES), in_map),
                pl.BlockSpec((row_tile, LANES), in_map),
            ],
            # One resident accumulator tile per core.
            out_specs=pl.BlockSpec((1, SUBLANES, LANES), lambda c, i: (c, 0, 0)),
        ),
        compiler_params=pltpu.CompilerParams(
            dimension_semantics=("parallel", "arbitrary"),
            vmem_limit_bytes=int(vmem_limit)),
        cost_estimate=cost,
    )(yt, yp)

    # Final cross-lane/core reduce + tail + 2*mean scaling on ~1 KiB of data.
    total = jnp.sum(partials, dtype=jnp.float32) + tail
    return 2.0 * total / jnp.float32(n)


def smape_loss_ref(y_true, y_pred):
    yt = y_true.astype(jnp.float32)
    yp = y_pred.astype(jnp.float32)
    num = jnp.abs(yt - yp)
    den = jnp.abs(yt) + jnp.abs(yp)
    return 2.0 * jnp.mean(num / (den + EPS))


if __name__ == "__main__":
    key = jax.random.PRNGKey(0)
    k1, k2 = jax.random.split(key)

    # Primary case: NCHW, small synthetic shapes (lane-aligned element count).
    shape = (2, 4, 16, 16)
    y_true = jax.random.normal(k1, shape, dtype=jnp.float32)
    y_pred = jax.random.normal(k2, shape, dtype=jnp.float32)
    out = jax.block_until_ready(smape_loss(y_true, y_pred))
    ref = smape_loss_ref(y_true, y_pred)
    assert jnp.allclose(out, ref, rtol=1e-5, atol=1e-6), (out, ref)

    # Unaligned size: exercises the wrapper tail + masked last block.
    shape2 = (3, 5, 7, 11)  # 1155 elements, 1155 % 128 = 3
    a = jax.random.normal(k1, shape2, dtype=jnp.float32)
    b = jax.random.normal(k2, shape2, dtype=jnp.float32)
    out2 = jax.block_until_ready(smape_loss(a, b))
    ref2 = smape_loss_ref(a, b)
    assert jnp.allclose(out2, ref2, rtol=1e-5, atol=1e-6), (out2, ref2)

    # Odd block count with a tiny tile: exercises the 2-core split, the
    # clamped/skipped overhang step and the masked last block together.
    c_arr = jax.random.normal(k1, (17 * 128 + 5,), dtype=jnp.float32)
    d_arr = jax.random.normal(k2, (17 * 128 + 5,), dtype=jnp.float32)
    out3 = jax.block_until_ready(smape_loss(c_arr, d_arr, max_row_tile=8))
    ref3 = smape_loss_ref(c_arr, d_arr)
    assert jnp.allclose(out3, ref3, rtol=1e-5, atol=1e-6), (out3, ref3)

    print("KERNEL_OK")
</pallas_src>

<mosaic_0001>
module attributes {stable_mosaic.version = 11 : i64} {
  func.func @_smape_partial_kernel(%arg0: i32, %arg1: i32, %arg2: memref<16x128xf32, #tpu.memory_space<vmem>>, %arg3: memref<16x128xf32, #tpu.memory_space<vmem>>, %arg4: memref<1x8x128xf32, #tpu.memory_space<vmem>>) attributes {dimension_semantics = [#tpu.dimension_semantics<parallel>, #tpu.dimension_semantics<arbitrary>], iteration_bounds = array<i64: 1, 1>, scalar_prefetch = 0 : i64, scratch_operands = 0 : i64, tpu.core_type = #tpu.core_type<tc>, window_params = [{transform_indices = @transform_0, window_bounds = array<i64: 16, 128>}, {transform_indices = @transform_1, window_bounds = array<i64: 16, 128>}, {transform_indices = @transform_2, window_bounds = array<i64: 1, 8, 128>}]} {
    %c1_i32 = arith.constant 1 : i32
    %0 = arith.muli %arg0, %c1_i32 : i32
    %1 = arith.addi %0, %arg1 : i32
    %c0_i32 = arith.constant 0 : i32
    %2 = arith.cmpi eq, %arg1, %c0_i32 : i32
    %3 = arith.extui %2 : i1 to i32
    %c0_i32_0 = arith.constant 0 : i32
    %4 = arith.cmpi ne, %3, %c0_i32_0 : i32
    scf.if %4 {
      %cst = arith.constant 0.000000e+00 : f32
      %8 = vector.broadcast %cst : f32 to vector<1x8x128xf32>
      %c0 = arith.constant 0 : index
      %c0_3 = arith.constant 0 : index
      %c0_4 = arith.constant 0 : index
      %9 = vector.load %arg4[%c0, %c0_3, %c0_4] : memref<1x8x128xf32, #tpu.memory_space<vmem>>, vector<1x8x128xf32>
      tpu.vector_store %arg4[%c0, %c0_3, %c0_4], %8 {strides = array<i32>} : memref<1x8x128xf32, #tpu.memory_space<vmem>>, vector<1x8x128xf32>,
    } else {
    }
    %c1_i32_1 = arith.constant 1 : i32
    %5 = arith.cmpi slt, %1, %c1_i32_1 : i32
    %6 = arith.extui %5 : i1 to i32
    %c0_i32_2 = arith.constant 0 : i32
    %7 = arith.cmpi ne, %6, %c0_i32_2 : i32
    scf.if %7 {
      %cst = arith.constant 0.000000e+00 : f32
      %8 = vector.broadcast %cst : f32 to vector<8x128xf32>
      %c0_i32_3 = arith.constant 0 : i32
      %c16_i32 = arith.constant 16 : i32
      %9 = arith.muli %c0_i32_3, %c16_i32 : i32
      %10 = tpu.assume_multiple %9, 16 : i32
      %11 = arith.index_cast %10 : i32 to index
      %c0 = arith.constant 0 : index
      %12 = vector.load %arg2[%11, %c0] : memref<16x128xf32, #tpu.memory_space<vmem>>, vector<16x128xf32>
      %13 = arith.index_cast %10 : i32 to index
      %c0_4 = arith.constant 0 : index
      %14 = vector.load %arg3[%13, %c0_4] : memref<16x128xf32, #tpu.memory_space<vmem>>, vector<16x128xf32>
      %15 = math.absf %12 : vector<16x128xf32>
      %16 = math.absf %14 : vector<16x128xf32>
      %17 = arith.addf %15, %16 : vector<16x128xf32>
      %cst_5 = arith.constant 9.99999993E-9 : f32
      %18 = vector.broadcast %cst_5 : f32 to vector<16x128xf32>
      %19 = arith.addf %17, %18 : vector<16x128xf32>
      %20 = arith.subf %12, %14 : vector<16x128xf32>
      %21 = math.absf %20 : vector<16x128xf32>
      %22 = tpu.reciprocal %19 : vector<16x128xf32> -> vector<16x128xf32>
      %23 = arith.mulf %21, %22 : vector<16x128xf32>
      %24 = vector.shape_cast %23 : vector<16x128xf32> to vector<2x8x128xf32>
      %cst_6 = arith.constant dense<0.000000e+00> : vector<8x128xf32>
      %25 = vector.multi_reduction <add>, %24, %cst_6 [0] : vector<2x8x128xf32> to vector<8x128xf32>
      %26 = arith.addf %8, %25 : vector<8x128xf32>
      %c1_i32_7 = arith.constant 1 : i32
      %c0_8 = arith.constant 0 : index
      %c0_9 = arith.constant 0 : index
      %c0_10 = arith.constant 0 : index
      %27 = vector.load %arg4[%c0_8, %c0_9, %c0_10] : memref<1x8x128xf32, #tpu.memory_space<vmem>>, vector<1x8x128xf32>
      %28 = vector.shape_cast %26 : vector<8x128xf32> to vector<1x8x128xf32>
      %29 = arith.addf %27, %28 : vector<1x8x128xf32>
      %c0_11 = arith.constant 0 : index
      %c0_12 = arith.constant 0 : index
      %c0_13 = arith.constant 0 : index
      %30 = vector.load %arg4[%c0_11, %c0_12, %c0_13] : memref<1x8x128xf32, #tpu.memory_space<vmem>>, vector<1x8x128xf32>
      tpu.vector_store %arg4[%c0_11, %c0_12, %c0_13], %29 {strides = array<i32>} : memref<1x8x128xf32, #tpu.memory_space<vmem>>, vector<1x8x128xf32>,
    } else {
    }
    return
  }
  func.func @transform_0(%arg0: i32, %arg1: i32) -> (i32, i32) {
    %c1_i32 = arith.constant 1 : i32
    %0 = arith.muli %arg0, %c1_i32 : i32
    %1 = arith.addi %0, %arg1 : i32
    %c0_i32 = arith.constant 0 : i32
    %2 = arith.minsi %1, %c0_i32 : i32
    %c0_i32_0 = arith.constant 0 : i32
    %c0_i32_1 = arith.constant 0 : i32
    return %2, %c0_i32_0 : i32, i32
  }
  func.func @transform_1(%arg0: i32, %arg1: i32) -> (i32, i32) {
    %c1_i32 = arith.constant 1 : i32
    %0 = arith.muli %arg0, %c1_i32 : i32
    %1 = arith.addi %0, %arg1 : i32
    %c0_i32 = arith.constant 0 : i32
    %2 = arith.minsi %1, %c0_i32 : i32
    %c0_i32_0 = arith.constant 0 : i32
    %c0_i32_1 = arith.constant 0 : i32
    return %2, %c0_i32_0 : i32, i32
  }
  func.func @transform_2(%arg0: i32, %arg1: i32) -> (i32, i32, i32) {
    %c0_i32 = arith.constant 0 : i32
    %c0_i32_0 = arith.constant 0 : i32
    %c0_i32_1 = arith.constant 0 : i32
    return %arg0, %c0_i32, %c0_i32_0 : i32, i32, i32
  }
}

</mosaic_0001>

<bundles_post_ra>
// kernel: tpu_custom_call.1
= control target key start
LH: loop header
LB: loop body
LE: loop exit
PB: predicated region body
PF: predicated region fallthrough
CT: control target
= control target key end

     0   :  { %7 = vsyncpa [#allocation3], 0  ;;  %s264_s0 = inlined_call_operand.hbm [shape: f32[16,128], index: 0, kind: input, shape index: {}]   ;;  %s265_s1 = inlined_call_operand.hbm [shape: f32[16,128], index: 1, kind: input, shape index: {}]   ;;  %s266_s2 = inlined_call_operand.hbm [shape: f32[1,8,128], index: 2, kind: output, shape index: {}]  }
   0x1   :  { %8 = vsyncpa [#allocation6], 0 }
   0x2   :  { %9 = vsyncpa [#allocation4], 0  ;;  %s20_s11 = sshll.u32 %s264_s0, 4  ;;  %s235_s12 = smov [#allocation2]   ;;  %s21_s11 = int_to_ptr.hbm [resolvable:$true] %s20_s11 }
   0x3   :  { %s22_s13 = sshll.u32 %s235_s12, 4  ;;  %s39_s16 = sshll.u32 %s265_s1, 4  ;;  %s23_s13 = int_to_ptr.vmem [resolvable:$true] %s22_s13  ;;  %s40_s16 = int_to_ptr.hbm [resolvable:$true] %s39_s16 }
   0x4   :  { %s236_s17 = smov 128   ;;  %s237_s18 = smov 8  }
   0x5   :  { %28 = dma.hbm_to_vmem [thread:$0]  %s21_s11, 256, %s23_s13, [#allocation3], %s236_s17, %s236_s17, %s237_s18  }
   0x6   :  { %s238_s19 = smov [#allocation5]  }
   0x7   :  { %s41_s20 = sshll.u32 %s238_s19, 4  ;;  %s42_s20 = int_to_ptr.vmem [resolvable:$true] %s41_s20 }
   0x8   :  { %47 = dma.hbm_to_vmem [thread:$0]  %s40_s16, 256, %s42_s20, [#allocation6], %s236_s17, %s236_s17, %s237_s18  }
   0x9   :  { %229 = dma.done.wait [#allocation3], 256  }
   0xa   :  { %230 = vsyncadd [#allocation3], 4294967040 }
   0xb   :  { %231 = dma.done.wait [#allocation6], 256  }
   0xc   :  { %232 = vsyncadd [#allocation6], 4294967040  ;;  %v74_v0 = vld [vmem:[#allocation2] sm:$0xff]  ;;  %v75_v1 = vld [vmem:[#allocation2 + $0x8] sm:$0xff]  ;;  %s239_s0 = smov [#allocation7]   ;;  %s132_s23 = sshll.u32 %s266_s2, 4  ;;  %s133_s23 = int_to_ptr.hbm [resolvable:$true] %s132_s23 }
   0xd   :  { %v76_v2 = vld [vmem:[#allocation5] sm:$0xff]  ;;  %v77_v3 = vld [vmem:[#allocation5 + $0x8] sm:$0xff]  ;;  %v78_v4 = vand.u32 2147483647, %v74_v0  ;;  %v79_v5 = vand.u32 2147483647, %v75_v1 }
   0xe   :  { %v80_v6 = vand.u32 2147483647, %v76_v2  ;;  %v81_v7 = vand.u32 2147483647, %v77_v3  ;;  %v86_v14 = vsub.f32 %v74_v0, %v76_v2  ;;  %v87_v16 = vsub.f32 %v75_v1, %v77_v3  ;;  %s130_s1 = sshll.u32 %s239_s0, 4  ;;  %s131_s1 = int_to_ptr.vmem [resolvable:$true] %s130_s1 }
  0x10   :  { %v82_v8 = vadd.f32 %v80_v6, %v78_v4  ;;  %v83_v9 = vadd.f32 %v81_v7, %v79_v5  ;;  %v88_v27 = vand.u32 2147483647, %v86_v14  ;;  %v89_v30 = vand.u32 2147483647, %v87_v16 }
  0x12   :  { %v84_v10 = vadd.f32 1e-08, %v82_v8  ;;  %v85_v11 = vadd.f32 1e-08, %v83_v9 }
  0x14   :  { %153 = vrcp.f32 %v84_v10  ;;  %vm95_vm0 = vweird.f32 %v84_v10  ;;  %v101_v17 = vand.u32 2147483648, %v84_v10  ;;  %v99_v20 = vand.u32 2147483647, %v84_v10 }
  0x15   :  { %155 = vrcp.f32 %v85_v11  ;;  %v115_v21 = vand.u32 2147483648, %v85_v11  ;;  %vm109_vm2 = vweird.f32 %v85_v11  ;;  %v113_v23 = vand.u32 2147483647, %v85_v11 }
  0x16   :  { %v102_v25 = vor.u32 1.1754944e-38, %v101_v17  ;;  %vm100_vm5 = vcmp.eq.f32.partialorder %v99_v20, 8.507059e+37 }
  0x17   :  { %v116_v29 = vor.u32 1.1754944e-38, %v115_v21  ;;  %vm114_vm7 = vcmp.eq.f32.partialorder %v113_v23, 8.507059e+37 }
  0x1a   :  { %v154_v12 = vpop.eup %153 }
  0x1b   :  { %v156_v13 = vpop.eup %155  ;;  %v91_v15 = vmul.f32 %v154_v12, %v84_v10  ;;  %vm96_vm1 = vweird.f32 %v154_v12 }
  0x1c   :  { %v105_v18 = vmul.f32 %v156_v13, %v85_v11  ;;  %vm110_vm3 = vweird.f32 %v156_v13  ;;  %vm97_vm4 = vmor %vm95_vm0, %vm96_vm1 }
  0x1d   :  { %v92_v19 = vsub.f32 1.0, %v91_v15  ;;  %vm111_vm6 = vmor %vm109_vm2, %vm110_vm3 }
  0x1e   :  { %v106_v22 = vsub.f32 1.0, %v105_v18 }
  0x1f   :  { %v93_v24 = vmul.f32 %v154_v12, %v92_v19 }
  0x20   :  { %v107_v26 = vmul.f32 %v156_v13, %v106_v22 }
  0x21   :  { %v94_v28 = vadd.f32 %v154_v12, %v93_v24 }
  0x22   :  { %v108_v31 = vadd.f32 %v156_v13, %v107_v26 }
  0x23   :  { %v98_v32 = vsel %vm97_vm4, %v154_v12, %v94_v28 }
  0x24   :  { %v103_v33 = vsel %vm100_vm5, %v102_v25, %v98_v32  ;;  %v112_v34 = vsel %vm111_vm6, %v156_v13, %v108_v31 }
  0x25   :  { %v117_v35 = vsel %vm114_vm7, %v116_v29, %v112_v34  ;;  %v118_v36 = vmul.f32 %v103_v33, %v88_v27 }
  0x26   :  { %v119_v37 = vmul.f32 %v117_v35, %v89_v30 }
  0x28   :  { %v120_v38 = vadd.f32 %v119_v37, %v118_v36 }
  0x2a   :  { %124 = vst [vmem:[#allocation7] sm:$0xff] %v120_v38 }
  0x2b   :  { %135 = dma.vmem_to_hbm [thread:$0]  %s131_s1, 128, %s133_s23, [#allocation4]  }
  0x2c   :  { %233 = dma.done.wait [#allocation4], 128  }
  0x2d   :  { %234 = vsyncadd [#allocation4], 4294967168 }
  0x2e   :  { %140 = vsyncpa [#allocation3], 1 }
  0x2f   :  { %141 = vsyncpa [#allocation6], 1 }
  0x30   :  { %142 = vsyncpa [#allocation4], 1 }

</bundles_post_ra>
